<compile_context>
chip_gen: v7x
topology: tpu7x:2x2x1
jax: 0.10.0
libtpu: 0.0.40
codegen_flags: <defaults>
</compile_context>

<pallas_src>
import math

import jax
import jax.numpy as jnp
from jax.experimental import pallas as pl
from jax.experimental.pallas import tpu as pltpu  # noqa: F401  (not needed at this size)

# ---- model dimensions (small, consistent with EncoderLayer(size=D)) ----
B = 2        # batch
S = 8        # sequence length
D = 32       # d_model (== `size`)
H = 4        # attention heads
DK = D // H
DFF = 64     # feed-forward hidden dim
EPS = 1e-6
P3 = 3 * D   # fused QKV output width (96) == packed slab width
BS = B * S   # flattened rows (16)
VEC_BIAS_ROW = 8  # first row of the (BS, BS) attention bias inside the vec slab


def _layer_norm(v, g, b):
    mu = jnp.mean(v, axis=-1, keepdims=True)
    var = jnp.mean((v - mu) ** 2, axis=-1, keepdims=True)
    return (v - mu) * jax.lax.rsqrt(var + EPS) * g + b


def encoder_layer_kernel(x_ref, w_ref, vec_ref, out_ref):
    # Single invocation: whole (B*S, D) slab processed at once.
    x = x_ref[...].astype(jnp.float32)            # (BS, D)
    w = w_ref[...]                                # (160, P3) bf16 packed weights
    vec = vec_ref[...]                            # (24, P3) f32 packed params + mask bias

    ln1_g = vec[0:1, :D]
    ln1_b = vec[1:2, :D]
    ln2_g = vec[2:3, :D]
    ln2_b = vec[3:4, :D]
    b_qkv = vec[4:5, :]                           # (1, 3D), 1/sqrt(dk) pre-folded into bq
    bo    = vec[5:6, :D]
    b1    = vec[6:7, :DFF]
    b2    = vec[7:8, :D]
    bias  = vec[VEC_BIAS_ROW:VEC_BIAS_ROW + BS, :BS]   # (BS, BS) additive attention bias

    w_qkv = w[0 * D:1 * D, :]                     # (D, 3D), 1/sqrt(dk) pre-folded into wq
    wo    = w[1 * D:2 * D, :D]                    # (D, D)
    w1    = w[2 * D:3 * D, :DFF]                  # (D, DFF)
    w2    = w[3 * D:3 * D + DFF, :D]              # (DFF, D)

    # ---------------- sublayer 0: pre-norm + multi-head self-attention ----------------
    y = _layer_norm(x, ln1_g, ln1_b)
    qkv = jnp.dot(y.astype(jnp.bfloat16), w_qkv,
                  preferred_element_type=jnp.float32) + b_qkv        # (BS, 3D) f32

    qb = qkv[:, 0 * D:1 * D].astype(jnp.bfloat16)
    kb = qkv[:, 1 * D:2 * D].astype(jnp.bfloat16)
    vb = qkv[:, 2 * D:3 * D].astype(jnp.bfloat16)

    ctxs = []
    for h in range(H):                             # static unroll, H tiny
        c0 = h * DK
        qh = qb[:, c0:c0 + DK]
        kh = kb[:, c0:c0 + DK]
        vh = vb[:, c0:c0 + DK]
        # one score matmul over the flattened batch; cross-batch blocks masked by `bias`
        s = jnp.dot(qh, kh.T, preferred_element_type=jnp.float32) + bias   # (BS, BS)
        s = s - jnp.max(s, axis=-1, keepdims=True)
        p = jnp.exp(s)
        p = p / jnp.sum(p, axis=-1, keepdims=True)                          # exact divide
        ctxs.append(jnp.dot(p.astype(jnp.bfloat16), vh,
                            preferred_element_type=jnp.float32))            # (BS, DK)
    ctx = jnp.concatenate(ctxs, axis=-1)                                     # (BS, D)
    attn = jnp.dot(ctx.astype(jnp.bfloat16), wo,
                   preferred_element_type=jnp.float32) + bo                 # (BS, D)
    x = x + attn                                   # residual (dropout = identity)

    # ---------------- sublayer 1: pre-norm + position-wise feed-forward ----------------
    y2 = _layer_norm(x, ln2_g, ln2_b)
    h1 = jnp.maximum(
        jnp.dot(y2.astype(jnp.bfloat16), w1, preferred_element_type=jnp.float32) + b1, 0.0)
    ff = jnp.dot(h1.astype(jnp.bfloat16), w2, preferred_element_type=jnp.float32) + b2
    out_ref[...] = (x + ff).astype(out_ref.dtype)


def pack_params(params, mask):
    """One-time packing of every weight / bias / mask into two slabs.

    Runs eagerly, OUTSIDE the per-call jitted path (per review: all concats/pads/scale
    folding and the additive mask bias are hoisted out of the kernel call).
    """
    (ln1_g, ln1_b, wq, bq, wk, bk, wv, bv, wo, bo,
     ln2_g, ln2_b, w1, b1, w2, b2) = params

    scale = 1.0 / math.sqrt(DK)

    # fused QKV projection with 1/sqrt(dk) folded into the Q columns / bias
    w_qkv = jnp.concatenate([wq * scale, wk, wv], axis=1)       # (D, 3D)
    b_qkv = jnp.concatenate([bq * scale, bk, bv], axis=1)       # (1, 3D)

    def pad_cols(m):
        return jnp.pad(m, ((0, 0), (0, P3 - m.shape[1])))

    # one bf16 weight slab: rows [0:D]=w_qkv, [D:2D]=wo, [2D:3D]=w1, [3D:3D+DFF]=w2
    w_slab = jnp.concatenate(
        [w_qkv, pad_cols(wo), pad_cols(w1), pad_cols(w2)], axis=0
    ).astype(jnp.bfloat16)                                      # (3D + DFF, 3D) = (160, 96)

    # precomputed additive attention bias over the flattened (B*S) rows:
    #   allowed(q_row, k_row) = same batch AND key position kept by `mask`
    keep = (mask.reshape(B, S) > 0).reshape(BS)                 # (BS,) key-keep flags
    batch_id = jnp.repeat(jnp.arange(B), S)                     # (BS,)
    allowed = (batch_id[:, None] == batch_id[None, :]) & keep[None, :]
    bias = jnp.where(allowed, 0.0, -1e9).astype(jnp.float32)    # (BS, BS)

    # one f32 vec slab: 8 small-parameter rows + BS mask-bias rows  -> (24, 96)
    vec = jnp.concatenate(
        [pad_cols(ln1_g), pad_cols(ln1_b), pad_cols(ln2_g), pad_cols(ln2_b),
         b_qkv, pad_cols(bo), pad_cols(b1), pad_cols(b2), pad_cols(bias)], axis=0)
    return w_slab, vec


@jax.jit
def encoder_layer(x, w_slab, vec):
    # Per-call path: just a (free, row-major) reshape and one pallas_call with 3 operands.
    x2d = x.reshape(BS, D)
    out2d = pl.pallas_call(
        encoder_layer_kernel,
        out_shape=jax.ShapeDtypeStruct((BS, D), x.dtype),
        # output reuses x2d's HBM buffer (x is fully loaded before the final store)
        input_output_aliases={0: 0},
    )(x2d, w_slab, vec)
    return out2d.reshape(B, S, D)


# --------------------------- pure-JAX reference for validation ---------------------------
def encoder_layer_ref(x, mask, params):
    (ln1_g, ln1_b, wq, bq, wk, bk, wv, bv, wo, bo,
     ln2_g, ln2_b, w1, b1, w2, b2) = params

    def ln(v, g, b):
        mu = jnp.mean(v, axis=-1, keepdims=True)
        var = jnp.mean((v - mu) ** 2, axis=-1, keepdims=True)
        return (v - mu) / jnp.sqrt(var + EPS) * g[0] + b[0]

    y = ln(x, ln1_g, ln1_b)
    q = y @ wq + bq[0]
    k = y @ wk + bk[0]
    v = y @ wv + bv[0]
    qh = q.reshape(B, S, H, DK).transpose(0, 2, 1, 3)
    kh = k.reshape(B, S, H, DK).transpose(0, 2, 1, 3)
    vh = v.reshape(B, S, H, DK).transpose(0, 2, 1, 3)
    scores = jnp.einsum("bhqd,bhkd->bhqk", qh, kh) / math.sqrt(DK)
    scores = jnp.where(mask[:, None, :, :] > 0, scores, -1e9)
    p = jax.nn.softmax(scores, axis=-1)
    a = jnp.einsum("bhqk,bhkd->bhqd", p, vh).transpose(0, 2, 1, 3).reshape(B, S, D)
    x = x + (a @ wo + bo[0])

    y2 = ln(x, ln2_g, ln2_b)
    ff = jnp.maximum(y2 @ w1 + b1[0], 0.0) @ w2 + b2[0]
    return x + ff


def make_params(key):
    keys = jax.random.split(key, 8)
    scale = 0.1
    ln1_g = jnp.ones((1, D), jnp.float32)
    ln1_b = jnp.zeros((1, D), jnp.float32)
    ln2_g = jnp.ones((1, D), jnp.float32)
    ln2_b = jnp.zeros((1, D), jnp.float32)
    wq = scale * jax.random.normal(keys[0], (D, D), jnp.float32)
    wk = scale * jax.random.normal(keys[1], (D, D), jnp.float32)
    wv = scale * jax.random.normal(keys[2], (D, D), jnp.float32)
    wo = scale * jax.random.normal(keys[3], (D, D), jnp.float32)
    bq = scale * jax.random.normal(keys[4], (1, D), jnp.float32)
    bk = jnp.zeros((1, D), jnp.float32)
    bv = jnp.zeros((1, D), jnp.float32)
    bo = scale * jax.random.normal(keys[5], (1, D), jnp.float32)
    w1 = scale * jax.random.normal(keys[6], (D, DFF), jnp.float32)
    b1 = jnp.zeros((1, DFF), jnp.float32)
    w2 = scale * jax.random.normal(keys[7], (DFF, D), jnp.float32)
    b2 = jnp.zeros((1, D), jnp.float32)
    return (ln1_g, ln1_b, wq, bq, wk, bk, wv, bv, wo, bo,
            ln2_g, ln2_b, w1, b1, w2, b2)


if __name__ == "__main__":
    key = jax.random.PRNGKey(0)
    kx, kp = jax.random.split(key)
    x = jax.random.normal(kx, (B, S, D), jnp.float32)
    # mask: keep the first 6 positions, mask the rest (1 = keep, 0 = mask), per-batch broadcast
    mask = (jnp.arange(S)[None, None, :] < 6).astype(jnp.float32)
    mask = jnp.broadcast_to(mask, (B, 1, S))
    params = make_params(kp)

    # pure-f32 reference (computed first so the aliased x buffer is irrelevant afterwards)
    ref = encoder_layer_ref(x, mask, params)

    # one-time prep (outside the per-call jitted path), then the single-kernel forward
    w_slab, vec = pack_params(params, mask)
    out = jax.block_until_ready(encoder_layer(x, w_slab, vec))

    assert out.shape == (B, S, D)
    # Tolerance reflects bf16 MXU operands (weights stored bf16, activations cast to bf16
    # at every matmul) vs. the pure-f32 reference; softmax divide itself is exact.
    assert jnp.allclose(out, ref, rtol=3e-2, atol=3e-2), \
        f"max abs diff {jnp.max(jnp.abs(out - ref))}"
    print("KERNEL_OK")
</pallas_src>

<mosaic_0001>
module attributes {stable_mosaic.version = 11 : i64} {
  func.func @encoder_layer_kernel(%arg0: memref<16x32xf32, #tpu.memory_space<vmem>>, %arg1: memref<160x96xbf16, #tpu.memory_space<vmem>>, %arg2: memref<24x96xf32, #tpu.memory_space<vmem>>, %arg3: memref<16x32xf32, #tpu.memory_space<vmem>>) attributes {dimension_semantics = [], scalar_prefetch = 0 : i64, scratch_operands = 0 : i64, tpu.core_type = #tpu.core_type<tc>} {
    %c0 = arith.constant 0 : index
    %c0_0 = arith.constant 0 : index
    %0 = vector.load %arg0[%c0, %c0_0] : memref<16x32xf32, #tpu.memory_space<vmem>>, vector<16x32xf32>
    %c0_1 = arith.constant 0 : index
    %c0_2 = arith.constant 0 : index
    %1 = vector.load %arg1[%c0_1, %c0_2] : memref<160x96xbf16, #tpu.memory_space<vmem>>, vector<160x96xbf16>
    %c0_3 = arith.constant 0 : index
    %c0_4 = arith.constant 0 : index
    %2 = vector.load %arg2[%c0_3, %c0_4] : memref<24x96xf32, #tpu.memory_space<vmem>>, vector<24x96xf32>
    %3 = vector.extract_strided_slice %2 {offsets = [0, 0], sizes = [1, 32], strides = [1, 1]} : vector<24x96xf32> to vector<1x32xf32>
    %4 = vector.extract_strided_slice %2 {offsets = [1, 0], sizes = [1, 32], strides = [1, 1]} : vector<24x96xf32> to vector<1x32xf32>
    %5 = vector.extract_strided_slice %2 {offsets = [2, 0], sizes = [1, 32], strides = [1, 1]} : vector<24x96xf32> to vector<1x32xf32>
    %6 = vector.extract_strided_slice %2 {offsets = [3, 0], sizes = [1, 32], strides = [1, 1]} : vector<24x96xf32> to vector<1x32xf32>
    %7 = vector.extract_strided_slice %2 {offsets = [4, 0], sizes = [1, 96], strides = [1, 1]} : vector<24x96xf32> to vector<1x96xf32>
    %8 = vector.extract_strided_slice %2 {offsets = [5, 0], sizes = [1, 32], strides = [1, 1]} : vector<24x96xf32> to vector<1x32xf32>
    %9 = vector.extract_strided_slice %2 {offsets = [6, 0], sizes = [1, 64], strides = [1, 1]} : vector<24x96xf32> to vector<1x64xf32>
    %10 = vector.extract_strided_slice %2 {offsets = [7, 0], sizes = [1, 32], strides = [1, 1]} : vector<24x96xf32> to vector<1x32xf32>
    %11 = vector.extract_strided_slice %2 {offsets = [8, 0], sizes = [16, 16], strides = [1, 1]} : vector<24x96xf32> to vector<16x16xf32>
    %12 = vector.extract_strided_slice %1 {offsets = [0, 0], sizes = [32, 96], strides = [1, 1]} : vector<160x96xbf16> to vector<32x96xbf16>
    %13 = vector.extract_strided_slice %1 {offsets = [32, 0], sizes = [32, 32], strides = [1, 1]} : vector<160x96xbf16> to vector<32x32xbf16>
    %14 = vector.extract_strided_slice %1 {offsets = [64, 0], sizes = [32, 64], strides = [1, 1]} : vector<160x96xbf16> to vector<32x64xbf16>
    %15 = vector.extract_strided_slice %1 {offsets = [96, 0], sizes = [64, 32], strides = [1, 1]} : vector<160x96xbf16> to vector<64x32xbf16>
    %cst = arith.constant dense<0.000000e+00> : vector<16xf32>
    %16 = vector.multi_reduction <add>, %0, %cst [1] : vector<16x32xf32> to vector<16xf32>
    %17 = vector.shape_cast %16 : vector<16xf32> to vector<16x1xf32>
    %cst_5 = arith.constant 3.200000e+01 : f32
    %18 = vector.broadcast %cst_5 : f32 to vector<16x1xf32>
    %19 = arith.divf %17, %18 : vector<16x1xf32>
    %20 = vector.broadcast %19 : vector<16x1xf32> to vector<16x32xf32>
    %21 = arith.subf %0, %20 : vector<16x32xf32>
    %22 = arith.mulf %21, %21 : vector<16x32xf32>
    %cst_6 = arith.constant dense<0.000000e+00> : vector<16xf32>
    %23 = vector.multi_reduction <add>, %22, %cst_6 [1] : vector<16x32xf32> to vector<16xf32>
    %24 = vector.shape_cast %23 : vector<16xf32> to vector<16x1xf32>
    %cst_7 = arith.constant 3.200000e+01 : f32
    %25 = vector.broadcast %cst_7 : f32 to vector<16x1xf32>
    %26 = arith.divf %24, %25 : vector<16x1xf32>
    %27 = vector.broadcast %19 : vector<16x1xf32> to vector<16x32xf32>
    %28 = arith.subf %0, %27 : vector<16x32xf32>
    %cst_8 = arith.constant 9.99999997E-7 : f32
    %29 = vector.broadcast %cst_8 : f32 to vector<16x1xf32>
    %30 = arith.addf %26, %29 : vector<16x1xf32>
    %31 = math.rsqrt %30 : vector<16x1xf32>
    %32 = vector.broadcast %31 : vector<16x1xf32> to vector<16x32xf32>
    %33 = arith.mulf %28, %32 : vector<16x32xf32>
    %34 = vector.broadcast %3 : vector<1x32xf32> to vector<16x32xf32>
    %35 = arith.mulf %33, %34 : vector<16x32xf32>
    %36 = vector.broadcast %4 : vector<1x32xf32> to vector<16x32xf32>
    %37 = arith.addf %35, %36 : vector<16x32xf32>
    %38 = arith.truncf %37 : vector<16x32xf32> to vector<16x32xbf16>
    %cst_9 = arith.constant dense<0.000000e+00> : vector<16x96xf32>
    %39 = tpu.matmul %38, %12, %cst_9 {dimension_numbers = #tpu.dot_dimension_numbers<[1], [0], [0], [1], [0, 0, 1, 1], [], []>} : vector<16x32xbf16>, vector<32x96xbf16>, vector<16x96xf32> -> vector<16x96xf32>
    %40 = vector.broadcast %7 : vector<1x96xf32> to vector<16x96xf32>
    %41 = arith.addf %39, %40 : vector<16x96xf32>
    %42 = vector.extract_strided_slice %41 {offsets = [0, 0], sizes = [16, 32], strides = [1, 1]} : vector<16x96xf32> to vector<16x32xf32>
    %43 = arith.truncf %42 : vector<16x32xf32> to vector<16x32xbf16>
    %44 = vector.extract_strided_slice %41 {offsets = [0, 32], sizes = [16, 32], strides = [1, 1]} : vector<16x96xf32> to vector<16x32xf32>
    %45 = arith.truncf %44 : vector<16x32xf32> to vector<16x32xbf16>
    %46 = vector.extract_strided_slice %41 {offsets = [0, 64], sizes = [16, 32], strides = [1, 1]} : vector<16x96xf32> to vector<16x32xf32>
    %47 = arith.truncf %46 : vector<16x32xf32> to vector<16x32xbf16>
    %48 = vector.extract_strided_slice %43 {offsets = [0, 0], sizes = [16, 8], strides = [1, 1]} : vector<16x32xbf16> to vector<16x8xbf16>
    %49 = vector.extract_strided_slice %45 {offsets = [0, 0], sizes = [16, 8], strides = [1, 1]} : vector<16x32xbf16> to vector<16x8xbf16>
    %50 = vector.extract_strided_slice %47 {offsets = [0, 0], sizes = [16, 8], strides = [1, 1]} : vector<16x32xbf16> to vector<16x8xbf16>
    %51 = tpu.transpose %49, [1, 0] : vector<16x8xbf16> -> vector<8x16xbf16>
    %cst_10 = arith.constant dense<0.000000e+00> : vector<16x16xf32>
    %52 = tpu.matmul %48, %51, %cst_10 {dimension_numbers = #tpu.dot_dimension_numbers<[1], [0], [0], [1], [0, 0, 1, 1], [], []>} : vector<16x8xbf16>, vector<8x16xbf16>, vector<16x16xf32> -> vector<16x16xf32>
    %53 = arith.addf %52, %11 : vector<16x16xf32>
    %cst_11 = arith.constant dense<0xFF800000> : vector<16xf32>
    %54 = vector.multi_reduction <maximumf>, %53, %cst_11 [1] : vector<16x16xf32> to vector<16xf32>
    %55 = vector.shape_cast %54 : vector<16xf32> to vector<16x1xf32>
    %56 = vector.broadcast %55 : vector<16x1xf32> to vector<16x16xf32>
    %57 = arith.subf %53, %56 : vector<16x16xf32>
    %58 = math.exp %57 : vector<16x16xf32>
    %cst_12 = arith.constant dense<0.000000e+00> : vector<16xf32>
    %59 = vector.multi_reduction <add>, %58, %cst_12 [1] : vector<16x16xf32> to vector<16xf32>
    %60 = vector.shape_cast %59 : vector<16xf32> to vector<16x1xf32>
    %61 = vector.broadcast %60 : vector<16x1xf32> to vector<16x16xf32>
    %62 = arith.divf %58, %61 : vector<16x16xf32>
    %63 = arith.truncf %62 : vector<16x16xf32> to vector<16x16xbf16>
    %cst_13 = arith.constant dense<0.000000e+00> : vector<16x8xf32>
    %64 = tpu.matmul %63, %50, %cst_13 {dimension_numbers = #tpu.dot_dimension_numbers<[1], [0], [0], [1], [0, 0, 1, 1], [], []>} : vector<16x16xbf16>, vector<16x8xbf16>, vector<16x8xf32> -> vector<16x8xf32>
    %65 = vector.extract_strided_slice %43 {offsets = [0, 8], sizes = [16, 8], strides = [1, 1]} : vector<16x32xbf16> to vector<16x8xbf16>
    %66 = vector.extract_strided_slice %45 {offsets = [0, 8], sizes = [16, 8], strides = [1, 1]} : vector<16x32xbf16> to vector<16x8xbf16>
    %67 = vector.extract_strided_slice %47 {offsets = [0, 8], sizes = [16, 8], strides = [1, 1]} : vector<16x32xbf16> to vector<16x8xbf16>
    %68 = tpu.transpose %66, [1, 0] : vector<16x8xbf16> -> vector<8x16xbf16>
    %cst_14 = arith.constant dense<0.000000e+00> : vector<16x16xf32>
    %69 = tpu.matmul %65, %68, %cst_14 {dimension_numbers = #tpu.dot_dimension_numbers<[1], [0], [0], [1], [0, 0, 1, 1], [], []>} : vector<16x8xbf16>, vector<8x16xbf16>, vector<16x16xf32> -> vector<16x16xf32>
    %70 = arith.addf %69, %11 : vector<16x16xf32>
    %cst_15 = arith.constant dense<0xFF800000> : vector<16xf32>
    %71 = vector.multi_reduction <maximumf>, %70, %cst_15 [1] : vector<16x16xf32> to vector<16xf32>
    %72 = vector.shape_cast %71 : vector<16xf32> to vector<16x1xf32>
    %73 = vector.broadcast %72 : vector<16x1xf32> to vector<16x16xf32>
    %74 = arith.subf %70, %73 : vector<16x16xf32>
    %75 = math.exp %74 : vector<16x16xf32>
    %cst_16 = arith.constant dense<0.000000e+00> : vector<16xf32>
    %76 = vector.multi_reduction <add>, %75, %cst_16 [1] : vector<16x16xf32> to vector<16xf32>
    %77 = vector.shape_cast %76 : vector<16xf32> to vector<16x1xf32>
    %78 = vector.broadcast %77 : vector<16x1xf32> to vector<16x16xf32>
    %79 = arith.divf %75, %78 : vector<16x16xf32>
    %80 = arith.truncf %79 : vector<16x16xf32> to vector<16x16xbf16>
    %cst_17 = arith.constant dense<0.000000e+00> : vector<16x8xf32>
    %81 = tpu.matmul %80, %67, %cst_17 {dimension_numbers = #tpu.dot_dimension_numbers<[1], [0], [0], [1], [0, 0, 1, 1], [], []>} : vector<16x16xbf16>, vector<16x8xbf16>, vector<16x8xf32> -> vector<16x8xf32>
    %82 = vector.extract_strided_slice %43 {offsets = [0, 16], sizes = [16, 8], strides = [1, 1]} : vector<16x32xbf16> to vector<16x8xbf16>
    %83 = vector.extract_strided_slice %45 {offsets = [0, 16], sizes = [16, 8], strides = [1, 1]} : vector<16x32xbf16> to vector<16x8xbf16>
    %84 = vector.extract_strided_slice %47 {offsets = [0, 16], sizes = [16, 8], strides = [1, 1]} : vector<16x32xbf16> to vector<16x8xbf16>
    %85 = tpu.transpose %83, [1, 0] : vector<16x8xbf16> -> vector<8x16xbf16>
    %cst_18 = arith.constant dense<0.000000e+00> : vector<16x16xf32>
    %86 = tpu.matmul %82, %85, %cst_18 {dimension_numbers = #tpu.dot_dimension_numbers<[1], [0], [0], [1], [0, 0, 1, 1], [], []>} : vector<16x8xbf16>, vector<8x16xbf16>, vector<16x16xf32> -> vector<16x16xf32>
    %87 = arith.addf %86, %11 : vector<16x16xf32>
    %cst_19 = arith.constant dense<0xFF800000> : vector<16xf32>
    %88 = vector.multi_reduction <maximumf>, %87, %cst_19 [1] : vector<16x16xf32> to vector<16xf32>
    %89 = vector.shape_cast %88 : vector<16xf32> to vector<16x1xf32>
    %90 = vector.broadcast %89 : vector<16x1xf32> to vector<16x16xf32>
    %91 = arith.subf %87, %90 : vector<16x16xf32>
    %92 = math.exp %91 : vector<16x16xf32>
    %cst_20 = arith.constant dense<0.000000e+00> : vector<16xf32>
    %93 = vector.multi_reduction <add>, %92, %cst_20 [1] : vector<16x16xf32> to vector<16xf32>
    %94 = vector.shape_cast %93 : vector<16xf32> to vector<16x1xf32>
    %95 = vector.broadcast %94 : vector<16x1xf32> to vector<16x16xf32>
    %96 = arith.divf %92, %95 : vector<16x16xf32>
    %97 = arith.truncf %96 : vector<16x16xf32> to vector<16x16xbf16>
    %cst_21 = arith.constant dense<0.000000e+00> : vector<16x8xf32>
    %98 = tpu.matmul %97, %84, %cst_21 {dimension_numbers = #tpu.dot_dimension_numbers<[1], [0], [0], [1], [0, 0, 1, 1], [], []>} : vector<16x16xbf16>, vector<16x8xbf16>, vector<16x8xf32> -> vector<16x8xf32>
    %99 = vector.extract_strided_slice %43 {offsets = [0, 24], sizes = [16, 8], strides = [1, 1]} : vector<16x32xbf16> to vector<16x8xbf16>
    %100 = vector.extract_strided_slice %45 {offsets = [0, 24], sizes = [16, 8], strides = [1, 1]} : vector<16x32xbf16> to vector<16x8xbf16>
    %101 = vector.extract_strided_slice %47 {offsets = [0, 24], sizes = [16, 8], strides = [1, 1]} : vector<16x32xbf16> to vector<16x8xbf16>
    %102 = tpu.transpose %100, [1, 0] : vector<16x8xbf16> -> vector<8x16xbf16>
    %cst_22 = arith.constant dense<0.000000e+00> : vector<16x16xf32>
    %103 = tpu.matmul %99, %102, %cst_22 {dimension_numbers = #tpu.dot_dimension_numbers<[1], [0], [0], [1], [0, 0, 1, 1], [], []>} : vector<16x8xbf16>, vector<8x16xbf16>, vector<16x16xf32> -> vector<16x16xf32>
    %104 = arith.addf %103, %11 : vector<16x16xf32>
    %cst_23 = arith.constant dense<0xFF800000> : vector<16xf32>
    %105 = vector.multi_reduction <maximumf>, %104, %cst_23 [1] : vector<16x16xf32> to vector<16xf32>
    %106 = vector.shape_cast %105 : vector<16xf32> to vector<16x1xf32>
    %107 = vector.broadcast %106 : vector<16x1xf32> to vector<16x16xf32>
    %108 = arith.subf %104, %107 : vector<16x16xf32>
    %109 = math.exp %108 : vector<16x16xf32>
    %cst_24 = arith.constant dense<0.000000e+00> : vector<16xf32>
    %110 = vector.multi_reduction <add>, %109, %cst_24 [1] : vector<16x16xf32> to vector<16xf32>
    %111 = vector.shape_cast %110 : vector<16xf32> to vector<16x1xf32>
    %112 = vector.broadcast %111 : vector<16x1xf32> to vector<16x16xf32>
    %113 = arith.divf %109, %112 : vector<16x16xf32>
    %114 = arith.truncf %113 : vector<16x16xf32> to vector<16x16xbf16>
    %cst_25 = arith.constant dense<0.000000e+00> : vector<16x8xf32>
    %115 = tpu.matmul %114, %101, %cst_25 {dimension_numbers = #tpu.dot_dimension_numbers<[1], [0], [0], [1], [0, 0, 1, 1], [], []>} : vector<16x16xbf16>, vector<16x8xbf16>, vector<16x8xf32> -> vector<16x8xf32>
    %116 = tpu.concatenate %64, %81, %98, %115 in 1 : vector<16x8xf32>, vector<16x8xf32>, vector<16x8xf32>, vector<16x8xf32> -> vector<16x32xf32>
    %117 = arith.truncf %116 : vector<16x32xf32> to vector<16x32xbf16>
    %cst_26 = arith.constant dense<0.000000e+00> : vector<16x32xf32>
    %118 = tpu.matmul %117, %13, %cst_26 {dimension_numbers = #tpu.dot_dimension_numbers<[1], [0], [0], [1], [0, 0, 1, 1], [], []>} : vector<16x32xbf16>, vector<32x32xbf16>, vector<16x32xf32> -> vector<16x32xf32>
    %119 = vector.broadcast %8 : vector<1x32xf32> to vector<16x32xf32>
    %120 = arith.addf %118, %119 : vector<16x32xf32>
    %121 = arith.addf %0, %120 : vector<16x32xf32>
    %cst_27 = arith.constant dense<0.000000e+00> : vector<16xf32>
    %122 = vector.multi_reduction <add>, %121, %cst_27 [1] : vector<16x32xf32> to vector<16xf32>
    %123 = vector.shape_cast %122 : vector<16xf32> to vector<16x1xf32>
    %cst_28 = arith.constant 3.200000e+01 : f32
    %124 = vector.broadcast %cst_28 : f32 to vector<16x1xf32>
    %125 = arith.divf %123, %124 : vector<16x1xf32>
    %126 = vector.broadcast %125 : vector<16x1xf32> to vector<16x32xf32>
    %127 = arith.subf %121, %126 : vector<16x32xf32>
    %128 = arith.mulf %127, %127 : vector<16x32xf32>
    %cst_29 = arith.constant dense<0.000000e+00> : vector<16xf32>
    %129 = vector.multi_reduction <add>, %128, %cst_29 [1] : vector<16x32xf32> to vector<16xf32>
    %130 = vector.shape_cast %129 : vector<16xf32> to vector<16x1xf32>
    %cst_30 = arith.constant 3.200000e+01 : f32
    %131 = vector.broadcast %cst_30 : f32 to vector<16x1xf32>
    %132 = arith.divf %130, %131 : vector<16x1xf32>
    %133 = vector.broadcast %125 : vector<16x1xf32> to vector<16x32xf32>
    %134 = arith.subf %121, %133 : vector<16x32xf32>
    %cst_31 = arith.constant 9.99999997E-7 : f32
    %135 = vector.broadcast %cst_31 : f32 to vector<16x1xf32>
    %136 = arith.addf %132, %135 : vector<16x1xf32>
    %137 = math.rsqrt %136 : vector<16x1xf32>
    %138 = vector.broadcast %137 : vector<16x1xf32> to vector<16x32xf32>
    %139 = arith.mulf %134, %138 : vector<16x32xf32>
    %140 = vector.broadcast %5 : vector<1x32xf32> to vector<16x32xf32>
    %141 = arith.mulf %139, %140 : vector<16x32xf32>
    %142 = vector.broadcast %6 : vector<1x32xf32> to vector<16x32xf32>
    %143 = arith.addf %141, %142 : vector<16x32xf32>
    %144 = arith.truncf %143 : vector<16x32xf32> to vector<16x32xbf16>
    %cst_32 = arith.constant dense<0.000000e+00> : vector<16x64xf32>
    %145 = tpu.matmul %144, %14, %cst_32 {dimension_numbers = #tpu.dot_dimension_numbers<[1], [0], [0], [1], [0, 0, 1, 1], [], []>} : vector<16x32xbf16>, vector<32x64xbf16>, vector<16x64xf32> -> vector<16x64xf32>
    %146 = vector.broadcast %9 : vector<1x64xf32> to vector<16x64xf32>
    %147 = arith.addf %145, %146 : vector<16x64xf32>
    %cst_33 = arith.constant 0.000000e+00 : f32
    %148 = vector.broadcast %cst_33 : f32 to vector<16x64xf32>
    %149 = arith.maximumf %147, %148 : vector<16x64xf32>
    %150 = arith.truncf %149 : vector<16x64xf32> to vector<16x64xbf16>
    %cst_34 = arith.constant dense<0.000000e+00> : vector<16x32xf32>
    %151 = tpu.matmul %150, %15, %cst_34 {dimension_numbers = #tpu.dot_dimension_numbers<[1], [0], [0], [1], [0, 0, 1, 1], [], []>} : vector<16x64xbf16>, vector<64x32xbf16>, vector<16x32xf32> -> vector<16x32xf32>
    %152 = vector.broadcast %10 : vector<1x32xf32> to vector<16x32xf32>
    %153 = arith.addf %151, %152 : vector<16x32xf32>
    %154 = arith.addf %121, %153 : vector<16x32xf32>
    %c0_35 = arith.constant 0 : index
    %c0_36 = arith.constant 0 : index
    %155 = vector.load %arg3[%c0_35, %c0_36] : memref<16x32xf32, #tpu.memory_space<vmem>>, vector<16x32xf32>
    tpu.vector_store %arg3[%c0_35, %c0_36], %154 {strides = array<i32>} : memref<16x32xf32, #tpu.memory_space<vmem>>, vector<16x32xf32>,
    return
  }
}

</mosaic_0001>

<bundles_post_ra>
// kernel: encoder_layer.1
= control target key start
LH: loop header
LB: loop body
LE: loop exit
PB: predicated region body
PF: predicated region fallthrough
CT: control target
= control target key end

     0   :  { %8 = vsyncpa [#allocation3], 0  ;;  %s1162_s12 = smov [#allocation2]   ;;  %s1377_s0 = inlined_call_operand.vmem [shape: f32[16,32], index: 0, kind: input, shape index: {}, may-alias: {0,3}]   ;;  %s1378_s1 = inlined_call_operand.hbm [shape: bf16[160,96], index: 1, kind: input, shape index: {}]   ;;  %s1379_s2 = inlined_call_operand.vmem [shape: f32[24,96], index: 2, kind: input, shape index: {}]   ;;  %s1380_s3 = inlined_call_operand.vmem [shape: f32[16,32], index: 3, kind: output, shape index: {}, may-alias: {0,3}]  }
   0x1   :  { %s16_s13 = sshll.u32 %s1162_s12, 4  ;;  %s1138_s16 = scalar_lea.hbm %s1378_s1, 1280  ;;  %s17_s13 = int_to_ptr.vmem [resolvable:$true] %s16_s13 }
   0x2   :  { %p1139_p0 = scmp.ne.s32.totalorder %s1378_s1, %s1138_s16  ;;  %p1142_p1 = scmp.lt.u32.totalorder %s1138_s16, %s1378_s1 }
   0x4   :  { %p1144_p2 = pnand %p1142_p1, %p1139_p0 }
   0x6   :  { %1147 = shalt.err (!%p1144_p2)
}
   0x7   :  { %s1148_s21 = scalar_lea.vmem %s17_s13, 1280  ;;  %p1153_p4 = scmp.lt.s32.totalorder %s17_s13, %s17_s13 }
   0x8   :  { %p1149_p3 = scmp.ne.s32.totalorder %s17_s13, %s1148_s21  ;;  %p1154_p5 = scmp.lt.s32.totalorder %s1148_s21, %s1148_s21 }
   0xa   :  { %p1155_p6 = por %p1154_p5, %p1153_p4 }
   0xc   :  { %p1156_p7 = pnand %p1155_p6, %p1149_p3 }
   0xe   :  { %1159 = shalt.err (!%p1156_p7)
}
   0xf   :  { %s1163_s22 = smov 64   ;;  %s1164_s23 = smov 4  }
  0x10   :  { %22 = dma.hbm_to_vmem [thread:$0]  %s1378_s1, 1280, %s17_s13, [#allocation3], %s1163_s22, %s1163_s22, %s1164_s23  }
  0x11   :  { %1160 = dma.done.wait [#allocation3], 1280  }
  0x12   :  { %1161 = vsyncadd [#allocation3], 4294966016  ;;  %vm54_vm0 = vcmask 261120   ;;  %v1217_v0 = vld [vmem:[%s1377_s0] sm:$0xff]  ;;  %v1222_v1 = vld [vmem:[%s1377_s0 + $0x8] sm:$0xff]  ;;  %v1165_v15 = vmov 0.0   ;;  %v82_v21 = vlaneseq }
  0x13   :  { %v55_v2 = vsel %vm54_vm0, %v1217_v0, 0.0  ;;  %v58_v3 = vsel %vm54_vm0, %v1222_v1, 0.0  ;;  %v1088_v14 = vld [vmem:[#allocation2] sm:$0xff]   ;;  %971 = vmatprep.subr.bf16.mxu0 %v1165_v15  ;;  %979 = vmatprep.subr.bf16.mxu1 %v1165_v15  ;;  %v1089_v16 = vld [vmem:[#allocation2 + $0x8] sm:$0xff]   ;;  %vm1166_vm1 = vmmov 0   ;;  %s1167_s30 = smov 88  }
  0x14   :  { %56 = vadd.xlane.f32.xlu0 %v55_v2  ;;  %972 = vmatpush3.bf16.msra.mxu0 %v1088_v14  ;;  %v1240_v24 = vshrl.u32 %v82_v21, 7  ;;  %v1246_v26 = vld [vmem:[%s1379_s2] sm:$0xff]  ;;  %s1168_s4 = smov 96   ;;  %s1169_s5 = smov 120   ;;  %vm159_vm2 = vcmask 64512   ;;  %v52_v59 = vld [vmem:[%s1379_s2 + $0x8] sm:$0xff] }
  0x15   :  { %975 = vmatprep.mubr.msk.bf16.mxu0 %vm1166_vm1, %v1165_v15  ;;  %973 = vmatprep.subr.bf16.mxu0 %v1165_v15  ;;  %s1170_s6 = smov 112   ;;  %s1171_s7 = smov 80   ;;  %v53_v61 = vld [vmem:[%s1379_s2 + $0x10] sm:$0xff]  ;;  %vm207_vm3 = vcmask 130048   ;;  %vm669_vm4 = vcmask 195584   ;;  %vm865_vm5 = vcmask 523264  }
  0x16   :  { %981 = vmatprep.mubr.msk.bf16.mxu1 %vm1166_vm1, %v1165_v15  ;;  %v84_v25 = vsub.s32 0, %v1240_v24  ;;  %v90_v30 = vsub.s32 1, %v1240_v24  ;;  %v97_v39 = vsub.s32 4, %v1240_v24  ;;  %s1172_s8 = smov 104   ;;  %s1173_s9 = smov 72  }
  0x17   :  { %s1174_s2 = smov 48   ;;  %s1175_s14 = smov 40  }
  0x18   :  { %59 = vadd.xlane.f32.xlu0 %v58_v3  ;;  %974 = vmatpush3.bf16.msra.mxu0 %v1089_v16  ;;  %v85_v29 = vrot.slane %v1246_v26, %v84_v25  ;;  %v91_v34 = vrot.slane %v1246_v26, %v90_v30  ;;  %v98_v40 = vrot.slane %v1246_v26, %v97_v39  ;;  %s1176_s15 = smov 56   ;;  %s1177_s16 = smov 8  }
  0x19   :  { %985 = vmatprep.subr.bf16.mxu0 %v1165_v15  ;;  %s1178_s17 = smov 16   ;;  %s1179_s18 = smov 24  }
  0xa1   :  { %v57_v4 = vpop.xlane.xlu0 %56 }
  0xa2   :  { %v62_v5 = vmul.f32 0.03125, %v57_v4 }
  0xa4   :  { %v64_v6 = vsub.f32 %v1217_v0, %v62_v5 }
  0xa5   :  { %v60_v7 = vpop.xlane.xlu0 %59 }
  0xa6   :  { %v63_v8 = vmul.f32 0.03125, %v60_v7  ;;  %v66_v9 = vmul.f32 %v64_v6, %v64_v6 }
  0xa8   :  { %v65_v10 = vsub.f32 %v1222_v1, %v63_v8  ;;  %v68_v11 = vsel %vm54_vm0, %v66_v9, 0.0 }
  0xa9   :  { %69 = vadd.xlane.f32.xlu1 %v68_v11 }
  0xaa   :  { %v67_v12 = vmul.f32 %v65_v10, %v65_v10 }
  0xac   :  { %v71_v13 = vsel %vm54_vm0, %v67_v12, 0.0 }
  0xad   :  { %72 = vadd.xlane.f32.xlu1 %v71_v13 }
 0x136   :  { %v70_v17 = vpop.xlane.xlu1 %69 }
 0x137   :  { %v74_v18 = vmul.f32 0.03125, %v70_v17 }
 0x139   :  { %v76_v19 = vadd.f32 1e-06, %v74_v18 }
 0x13a   :  { %v73_v20 = vpop.xlane.xlu1 %72 }
 0x13b   :  { %1098 = vrsqrt.f32 %v76_v19  ;;  %v75_v22 = vmul.f32 0.03125, %v73_v20 }
 0x13d   :  { %v77_v23 = vadd.f32 1e-06, %v75_v22 }
 0x13f   :  { %1100 = vrsqrt.f32 %v77_v23 }
 0x145   :  { %v1099_v27 = vpop.eup %1098 }
 0x146   :  { %v80_v28 = vmul.f32 %v1099_v27, %v64_v6 }
 0x148   :  { %v86_v33 = vmul.f32 %v85_v29, %v80_v28 }
 0x149   :  { %v1101_v31 = vpop.eup %1100 }
 0x14a   :  { %v81_v32 = vmul.f32 %v1101_v31, %v65_v10  ;;  %v92_v36 = vadd.f32 %v91_v34, %v86_v33 }
 0x14c   :  { %v87_v35 = vmul.f32 %v85_v29, %v81_v32 }
 0x14e   :  { %v93_v37 = vadd.f32 %v91_v34, %v87_v35 }
 0x150   :  { %v94_v38 = vpack.c.bf16 %v93_v37, %v92_v36 }
 0x152   :  { %976 = vmatmul.mubr.msk.bf16.vlgmr.msra.gmra.mrb[0].mxu0 %vm54_vm0, %v94_v38 }
 0x153   :  { %987 = vmatprep.mubr.msk.bf16.mxu0 %vm1166_vm1, %v1165_v15 }
 0x225   :  { %v148_v41 = vpop.f32.mrb[0].mxu0 }
 0x226   :  { %v977_v42 = vpop.f32.mrb[1].mxu0  ;;  %v149_v44 = vadd.f32 %v148_v41, %v98_v40 }
 0x227   :  { %v151_v43 = vpop.f32.mrb[2].mxu0 }
 0x228   :  { %v152_v45 = vadd.f32 %v151_v43, %v98_v40  ;;  %v978_v46 = vpop.f32.mrb[3].mxu0 }
 0x22a   :  { %v1256_v47 = vpack.c.bf16 %v152_v45, %v149_v44 }
 0x22c   :  { %280 = vrot.lane.b32.xlu1 %v1256_v47, %s1167_s30  ;;  %157 = vrot.lane.b32.xlu0 %v1256_v47, %s1168_s4 }
 0x230   :  { %278 = vrot.lane.b32.xlu1 %v1256_v47, %s1169_s5  ;;  %399 = vrot.lane.b32.xlu0 %v1256_v47, %s1170_s6 }
 0x234   :  { %401 = vrot.lane.b32.xlu1 %v1256_v47, %s1171_s7  ;;  %520 = vrot.lane.b32.xlu0 %v1256_v47, %s1172_s8 }
 0x238   :  { %522 = vrot.lane.b32.xlu1 %v1256_v47, %s1173_s9 }
 0x29e   :  { %v158_v48 = vpop.permute.xlu0 %157  ;;  %v281_v50 = vpop.permute.xlu1 %280 }
 0x29f   :  { %v164_v49 = vsel %vm159_vm2, %v158_v48, 0  ;;  %v286_v52 = vsel %vm159_vm2, %v281_v50, 0 }
 0x2a0   :  { %980 = vmatpush3.bf16.xpose.msra.mxu1 %v164_v49 }
 0x2a1   :  { %991 = vmatprep.subr.bf16.mxu1 %v1165_v15 }
 0x2a2   :  { %v279_v51 = vpop.permute.xlu1 %278  ;;  %v400_v56 = vpop.permute.xlu0 %399 }
 0x2a6   :  { %v402_v53 = vpop.permute.xlu1 %401  ;;  %v521_v58 = vpop.permute.xlu0 %520 }
 0x2a7   :  { %982 = vmatmul.mubr.msk.bf16.vlgmr.msra.gmra.mrb[0].mxu1 %vm159_vm2, %v1256_v47  ;;  %v407_v54 = vsel %vm159_vm2, %v402_v53, 0 }
 0x2a8   :  { %992 = vmatpush3.bf16.xpose.msra.mxu1 %v286_v52  ;;  %993 = vmatprep.mubr.msk.bf16.mxu1 %vm1166_vm1, %v1165_v15 }
 0x2a9   :  { %1003 = vmatprep.subr.bf16.mxu1 %v1165_v15 }
 0x2aa   :  { %v523_v55 = vpop.permute.xlu1 %522 }
 0x2ab   :  { %v528_v57 = vsel %vm159_vm2, %v523_v55, 0 }
 0x2af   :  { %994 = vmatmul.mubr.msk.bf16.vlgmr.msra.gmra.mrb[4].mxu1 %vm159_vm2, %v279_v51 }
 0x2b0   :  { %1004 = vmatpush3.bf16.xpose.msra.mxu1 %v407_v54  ;;  %1005 = vmatprep.mubr.msk.bf16.mxu1 %vm1166_vm1, %v1165_v15 }
 0x2b1   :  { %1015 = vmatprep.subr.bf16.mxu1 %v1165_v15 }
 0x2b7   :  { %1006 = vmatmul.mubr.msk.bf16.vlgmr.msra.gmra.mrb[8].mxu1 %vm159_vm2, %v400_v56 }
 0x2b8   :  { %1016 = vmatpush3.bf16.xpose.msra.mxu1 %v528_v57  ;;  %1017 = vmatprep.mubr.msk.bf16.mxu1 %vm1166_vm1, %v1165_v15 }
 0x2b9   :  { %1027 = vmatprep.subr.bf16.mxu1 %v1165_v15 }
 0x2bf   :  { %1018 = vmatmul.mubr.msk.bf16.vlgmr.msra.gmra.mrb[12].mxu1 %vm159_vm2, %v521_v58 }
 0x2c0   :  { %1031 = vmatprep.mubr.msk.bf16.mxu1 %vm1166_vm1, %v1165_v15 }
 0x37a   :  { %v200_v60 = vpop.f32.mrb[0].mxu1 }
 0x37b   :  { %v201_v62 = vadd.f32 %v200_v60, %v52_v59  ;;  %v983_v63 = vpop.f32.mrb[1].mxu1 }
 0x37c   :  { %v203_v2 = vpop.f32.mrb[2].mxu1 }
 0x37d   :  { %v204_v3 = vadd.f32 %v203_v2, %v53_v61  ;;  %v984_v4 = vpop.f32.mrb[3].mxu1  ;;  %v208_v5 = vsel %vm207_vm3, %v201_v62, -inf }
 0x37e   :  { %209 = vmax.xlane.f32.xlu1 %v208_v5 }
 0x37f   :  { %v211_v6 = vsel %vm207_vm3, %v204_v3, -inf }
 0x380   :  { %212 = vmax.xlane.f32.xlu0 %v211_v6 }
 0x382   :  { %v322_v7 = vpop.f32.mrb[4].mxu1 }
 0x383   :  { %v323_v8 = vadd.f32 %v322_v7, %v52_v59  ;;  %v995_v9 = vpop.f32.mrb[5].mxu1 }
 0x384   :  { %v325_v10 = vpop.f32.mrb[6].mxu1 }
 0x385   :  { %v326_v11 = vadd.f32 %v325_v10, %v53_v61  ;;  %v996_v12 = vpop.f32.mrb[7].mxu1  ;;  %v329_v13 = vsel %vm207_vm3, %v323_v8, -inf }
 0x386   :  { %330 = vmax.xlane.f32.xlu0 %v329_v13 }
 0x387   :  { %v332_v14 = vsel %vm207_vm3, %v326_v11, -inf }
 0x38a   :  { %333 = vmax.xlane.f32.xlu0 %v332_v14  ;;  %v443_v16 = vpop.f32.mrb[8].mxu1 }
 0x38b   :  { %v444_v17 = vadd.f32 %v443_v16, %v52_v59  ;;  %v1007_v18 = vpop.f32.mrb[9].mxu1 }
 0x38c   :  { %v446_v19 = vpop.f32.mrb[10].mxu1 }
 0x38d   :  { %v447_v20 = vadd.f32 %v446_v19, %v53_v61  ;;  %v1008_v21 = vpop.f32.mrb[11].mxu1  ;;  %v450_v22 = vsel %vm207_vm3, %v444_v17, -inf }
 0x38e   :  { %451 = vmax.xlane.f32.xlu1 %v450_v22 }
 0x38f   :  { %v453_v23 = vsel %vm207_vm3, %v447_v20, -inf }
 0x390   :  { %454 = vmax.xlane.f32.xlu0 %v453_v23 }
 0x392   :  { %v564_v25 = vpop.f32.mrb[12].mxu1 }
 0x393   :  { %v565_v27 = vadd.f32 %v564_v25, %v52_v59  ;;  %v1019_v28 = vpop.f32.mrb[13].mxu1 }
 0x394   :  { %v567_v29 = vpop.f32.mrb[14].mxu1 }
 0x395   :  { %v568_v30 = vadd.f32 %v567_v29, %v53_v61  ;;  %v1020_v31 = vpop.f32.mrb[15].mxu1  ;;  %v571_v32 = vsel %vm207_vm3, %v565_v27, -inf }
 0x396   :  { %572 = vmax.xlane.f32.xlu1 %v571_v32 }
 0x397   :  { %v574_v33 = vsel %vm207_vm3, %v568_v30, -inf }
 0x398   :  { %575 = vmax.xlane.f32.xlu0 %v574_v33 }
 0x3a7   :  { %231 = vrot.lane.b32.xlu1 %v1256_v47, %s1163_s22 }
 0x40b   :  { %v210_v34 = vpop.xlane.xlu1 %209 }
 0x40c   :  { %v214_v35 = vsub.f32 %v201_v62, %v210_v34 }
 0x40d   :  { %v213_v36 = vpop.xlane.xlu0 %212 }
 0x40e   :  { %v216_v37 = vmul.f32 1.442695, %v214_v35  ;;  %v215_v38 = vsub.f32 %v204_v3, %v213_v36 }
 0x410   :  { %1102 = vpow2.f32 %v216_v37  ;;  %v218_v39 = vmul.f32 1.442695, %v215_v38 }
 0x412   :  { %1104 = vpow2.f32 %v218_v39 }
 0x413   :  { %v331_v40 = vpop.xlane.xlu0 %330 }
 0x414   :  { %v335_v41 = vsub.f32 %v323_v8, %v331_v40 }
 0x416   :  { %v337_v42 = vmul.f32 1.442695, %v335_v41 }
 0x417   :  { %v334_v43 = vpop.xlane.xlu0 %333 }
 0x418   :  { %1106 = vpow2.f32 %v337_v42  ;;  %v336_v44 = vsub.f32 %v326_v11, %v334_v43 }
 0x41a   :  { %v1103_v45 = vpop.eup %1102  ;;  %v339_v46 = vmul.f32 1.442695, %v336_v44 }
 0x41b   :  { %v452_v48 = vpop.xlane.xlu1 %451  ;;  %v220_v49 = vsel %vm207_vm3, %v1103_v45, 0.0 }
 0x41c   :  { %v1105_v50 = vpop.eup %1104  ;;  %1108 = vpow2.f32 %v339_v46  ;;  %v456_v51 = vsub.f32 %v444_v17, %v452_v48  ;;  %221 = vadd.xlane.f32.xlu1 %v220_v49 }
 0x41d   :  { %v455_v52 = vpop.xlane.xlu0 %454  ;;  %v223_v53 = vsel %vm207_vm3, %v1105_v50, 0.0 }
 0x41e   :  { %v458_v54 = vmul.f32 1.442695, %v456_v51  ;;  %v457_v55 = vsub.f32 %v447_v20, %v455_v52  ;;  %224 = vadd.xlane.f32.xlu0 %v223_v53 }
 0x420   :  { %1110 = vpow2.f32 %v458_v54  ;;  %v460_v56 = vmul.f32 1.442695, %v457_v55  ;;  %v1090_v55 = vld [vmem:[#allocation2 + $0x10] sm:$0xff]  }
 0x421   :  { %1028 = vmatpush3.bf16.msra.mxu1 %v1090_v55 }
 0x422   :  { %v1107_v57 = vpop.eup %1106  ;;  %1112 = vpow2.f32 %v460_v56  ;;  %1029 = vmatprep.subr.bf16.mxu1 %v1165_v15 }
 0x423   :  { %v573_v58 = vpop.xlane.xlu1 %572  ;;  %v341_v59 = vsel %vm207_vm3, %v1107_v57, 0.0 }
 0x424   :  { %v577_v60 = vsub.f32 %v565_v27, %v573_v58  ;;  %342 = vadd.xlane.f32.xlu1 %v341_v59 }
 0x425   :  { %v576_v61 = vpop.xlane.xlu0 %575 }
 0x426   :  { %v1109_v62 = vpop.eup %1108  ;;  %v579_v63 = vmul.f32 1.442695, %v577_v60  ;;  %v578_v2 = vsub.f32 %v568_v30, %v576_v61  ;;  %v1091_v60 = vld [vmem:[#allocation2 + $0x18] sm:$0xff]  }
 0x427   :  { %v232_v3 = vpop.permute.xlu1 %231  ;;  %v344_v4 = vsel %vm207_vm3, %v1109_v62, 0.0  ;;  %1030 = vmatpush3.bf16.msra.mxu1 %v1091_v60  ;;  %v769_v60 = vsub.s32 3, %v1240_v24 }
 0x428   :  { %1114 = vpow2.f32 %v579_v63  ;;  %v581_v5 = vmul.f32 1.442695, %v578_v2  ;;  %986 = vmatpush3.bf16.msra.mxu0 %v232_v3  ;;  %345 = vadd.xlane.f32.xlu0 %v344_v4 }
 0x429   :  { %997 = vmatprep.subr.bf16.mxu0 %v1165_v15  ;;  %1043 = vmatprep.subr.bf16.mxu1 %v1165_v15 }
 0x42a   :  { %v1111_v6 = vpop.eup %1110  ;;  %1116 = vpow2.f32 %v581_v5 }
 0x42b   :  { %v462_v7 = vsel %vm207_vm3, %v1111_v6, 0.0 }
 0x42c   :  { %v1113_v8 = vpop.eup %1112  ;;  %463 = vadd.xlane.f32.xlu1 %v462_v7 }
 0x42d   :  { %v465_v9 = vsel %vm207_vm3, %v1113_v8, 0.0 }
 0x42e   :  { %466 = vadd.xlane.f32.xlu0 %v465_v9 }
 0x432   :  { %v1115_v10 = vpop.eup %1114 }
 0x433   :  { %v583_v11 = vsel %vm207_vm3, %v1115_v10, 0.0 }
 0x434   :  { %v1117_v12 = vpop.eup %1116  ;;  %584 = vadd.xlane.f32.xlu1 %v583_v11 }
 0x435   :  { %v586_v13 = vsel %vm207_vm3, %v1117_v12, 0.0 }
 0x436   :  { %587 = vadd.xlane.f32.xlu0 %v586_v13 }
 0x445   :  { %473 = vrot.lane.b32.xlu1 %v1256_v47, %s1174_s2 }
 0x449   :  { %594 = vrot.lane.b32.xlu1 %v1256_v47, %s1175_s14 }
 0x44c   :  { %352 = vrot.lane.b32.xlu0 %v1256_v47, %s1176_s15 }
 0x4a9   :  { %v222_v14 = vpop.xlane.xlu1 %221 }
 0x4aa   :  { %1118 = vrcp.f32 %v222_v14 }
 0x4ab   :  { %v225_v16 = vpop.xlane.xlu0 %224 }
 0x4ac   :  { %1120 = vrcp.f32 %v225_v16 }
 0x4b1   :  { %v343_v22 = vpop.xlane.xlu1 %342 }
 0x4b4   :  { %v1119_v17 = vpop.eup %1118 }
 0x4b5   :  { %v346_v18 = vpop.xlane.xlu0 %345  ;;  %v227_v20 = vmul.f32 %v1119_v17, %v1103_v45 }
 0x4b6   :  { %v1121_v19 = vpop.eup %1120  ;;  %1122 = vrcp.f32 %v346_v18 }
 0x4b7   :  { %v229_v21 = vmul.f32 %v1121_v19, %v1105_v50  ;;  %1124 = vrcp.f32 %v343_v22 }
 0x4b9   :  { %v230_v23 = vpack.c.bf16 %v229_v21, %v227_v20  ;;  %v464_v47 = vpop.xlane.xlu1 %463 }
 0x4bb   :  { %988 = vmatmul.mubr.msk.bf16.vlgmr.msra.gmra.mrb[4].mxu0 %vm207_vm3, %v230_v23  ;;  %v467_v25 = vpop.xlane.xlu0 %466 }
 0x4bc   :  { %999 = vmatprep.mubr.msk.bf16.mxu0 %vm1166_vm1, %v1165_v15  ;;  %1126 = vrcp.f32 %v467_v25  ;;  %v675_v25 = vsub.s32 5, %v1240_v24 }
 0x4bd   :  { %1128 = vrcp.f32 %v464_v47 }
 0x4be   :  { %v676_v47 = vrot.slane %v1246_v26, %v675_v25 }
 0x4c0   :  { %v1123_v27 = vpop.eup %1122 }
 0x4c1   :  { %v1125_v29 = vpop.eup %1124  ;;  %v350_v30 = vmul.f32 %v1123_v27, %v1109_v62  ;;  %v585_v31 = vpop.xlane.xlu1 %584 }
 0x4c2   :  { %v348_v32 = vmul.f32 %v1125_v29, %v1107_v57 }
 0x4c3   :  { %v588_v28 = vpop.xlane.xlu0 %587 }
 0x4c4   :  { %1130 = vrcp.f32 %v588_v28  ;;  %v351_v34 = vpack.c.bf16 %v350_v30, %v348_v32 }
 0x4c5   :  { %1132 = vrcp.f32 %v585_v31  ;;  %v474_v36 = vpop.permute.xlu1 %473 }
 0x4c6   :  { %v1127_v35 = vpop.eup %1126 }
 0x4c7   :  { %v353_v33 = vpop.permute.xlu0 %352  ;;  %v1129_v37 = vpop.eup %1128  ;;  %v471_v38 = vmul.f32 %v1127_v35, %v1113_v8 }
 0x4c8   :  { %998 = vmatpush3.bf16.msra.mxu0 %v353_v33  ;;  %v469_v39 = vmul.f32 %v1129_v37, %v1111_v6 }
 0x4c9   :  { %1009 = vmatprep.subr.bf16.mxu0 %v1165_v15  ;;  %v595_v42 = vpop.permute.xlu1 %594 }
 0x4ca   :  { %v472_v40 = vpack.c.bf16 %v471_v38, %v469_v39 }
 0x4cb   :  { %1000 = vmatmul.mubr.msk.bf16.vlgmr.msra.gmra.mrb[8].mxu0 %vm207_vm3, %v351_v34 }
 0x4cc   :  { %1010 = vmatpush3.bf16.msra.mxu0 %v474_v36  ;;  %1011 = vmatprep.mubr.msk.bf16.mxu0 %vm1166_vm1, %v1165_v15 }
 0x4cd   :  { %1021 = vmatprep.subr.bf16.mxu0 %v1165_v15 }
 0x4ce   :  { %v1131_v41 = vpop.eup %1130 }
 0x4cf   :  { %v1133_v43 = vpop.eup %1132  ;;  %v592_v44 = vmul.f32 %v1131_v41, %v1117_v12 }
 0x4d0   :  { %v590_v45 = vmul.f32 %v1133_v43, %v1115_v10 }
 0x4d2   :  { %v593_v46 = vpack.c.bf16 %v592_v44, %v590_v45  ;;  %v1092_v45 = vld [vmem:[#allocation2 + $0x20] sm:$0xff]  }
 0x4d3   :  { %1012 = vmatmul.mubr.msk.bf16.vlgmr.msra.gmra.mrb[12].mxu0 %vm207_vm3, %v472_v40 }
 0x4d4   :  { %1022 = vmatpush3.bf16.msra.mxu0 %v595_v42  ;;  %1023 = vmatprep.mubr.msk.bf16.mxu0 %vm1166_vm1, %v1165_v15 }
 0x4d5   :  { %1035 = vmatprep.subr.bf16.mxu0 %v1165_v15 }
 0x4db   :  { %1024 = vmatmul.mubr.msk.bf16.vlgmr.msra.gmra.mrb[16].mxu0 %vm207_vm3, %v593_v46  ;;  %v1093_v46 = vld [vmem:[#allocation2 + $0x28] sm:$0xff]  }
 0x4dc   :  { %1039 = vmatprep.mubr.msk.bf16.mxu0 %vm1166_vm1, %v1165_v15  ;;  %1036 = vmatpush3.bf16.msra.mxu0 %v1092_v45 }
 0x4dd   :  { %1037 = vmatprep.subr.bf16.mxu0 %v1165_v15 }
 0x4e0   :  { %1038 = vmatpush3.bf16.msra.mxu0 %v1093_v46 }
 0x58e   :  { %v271_v48 = vpop.f32.mrb[4].mxu0 }
 0x58f   :  { %v989_v49 = vpop.f32.mrb[5].mxu0 }
 0x590   :  { %v274_v50 = vpop.f32.mrb[6].mxu0  ;;  %v1095_v49 = vld [vmem:[#allocation2 + $0x38] sm:$0xff]  }
 0x591   :  { %v990_v51 = vpop.f32.mrb[7].mxu0 }
 0x59e   :  { %v392_v52 = vpop.f32.mrb[8].mxu0 }
 0x59f   :  { %v1001_v53 = vpop.f32.mrb[9].mxu0 }
 0x5a0   :  { %v395_v54 = vpop.f32.mrb[10].mxu0 }
 0x5a1   :  { %v1073_v56 = vpack.i.bf16 %v395_v54, %v392_v52  ;;  %v1002_v57 = vpop.f32.mrb[11].mxu0 }
 0x5a3   :  { %1074 = vrot.lane.b32.xlu1 %v1073_v56, %s1177_s16  ;;  %v763_v56 = vsub.s32 2, %v1240_v24 }
 0x5a6   :  { %v513_v58 = vpop.f32.mrb[12].mxu0 }
 0x5a7   :  { %v1013_v59 = vpop.f32.mrb[13].mxu0 }
 0x5a8   :  { %v516_v61 = vpop.f32.mrb[14].mxu0 }
 0x5a9   :  { %v1078_v62 = vpack.i.bf16 %v516_v61, %v513_v58  ;;  %v1014_v63 = vpop.f32.mrb[15].mxu0  ;;  %v764_v58 = vrot.slane %v1246_v26, %v763_v56 }
 0x5ab   :  { %1079 = vrot.lane.b32.xlu0 %v1078_v62, %s1178_s17 }
 0x5ae   :  { %v634_v2 = vpop.f32.mrb[16].mxu0 }
 0x5af   :  { %v1025_v3 = vpop.f32.mrb[17].mxu0 }
 0x5b0   :  { %v637_v4 = vpop.f32.mrb[18].mxu0 }
 0x5b1   :  { %v1083_v5 = vpack.i.bf16 %v637_v4, %v634_v2  ;;  %v1026_v6 = vpop.f32.mrb[19].mxu0  ;;  %v770_v2 = vrot.slane %v1246_v26, %v769_v60 }
 0x5b3   :  { %1084 = vrot.lane.b32.xlu1 %v1083_v5, %s1179_s18 }
 0x615   :  { %v1075_v7 = vpop.permute.xlu1 %1074 }
 0x616   :  { %v1077_v9 = vunpack.i.h.bf16 %v1075_v7  ;;  %v1076_v10 = vunpack.i.l.bf16 %v1075_v7  ;;  %v1096_v7 = vld [vmem:[#allocation2 + $0x40] sm:$0xff]  }
 0x618   :  { %v666_v14 = vsel %vm159_vm2, %v274_v50, %v1077_v9  ;;  %v665_v16 = vsel %vm159_vm2, %v271_v48, %v1076_v10  ;;  %v1094_v48 = vld [vmem:[#allocation2 + $0x30] sm:$0xff]   ;;  %v776_v9 = vsub.s32 6, %v1240_v24 }
 0x61a   :  { %v777_v10 = vrot.slane %v1246_v26, %v776_v9 }
 0x61d   :  { %v1080_v8 = vpop.permute.xlu0 %1079 }
 0x61e   :  { %v1082_v11 = vunpack.i.h.bf16 %v1080_v8  ;;  %v1081_v12 = vunpack.i.l.bf16 %v1080_v8  ;;  %v1097_v8 = vld [vmem:[#allocation2 + $0x48] sm:$0xff]  }
 0x620   :  { %v668_v19 = vsel %vm207_vm3, %v666_v14, %v1082_v11  ;;  %v667_v20 = vsel %vm207_vm3, %v665_v16, %v1081_v12 }
 0x625   :  { %v1085_v13 = vpop.permute.xlu1 %1084 }
 0x626   :  { %v1087_v17 = vunpack.i.h.bf16 %v1085_v13  ;;  %v1086_v18 = vunpack.i.l.bf16 %v1085_v13 }
 0x628   :  { %v671_v21 = vsel %vm669_vm4, %v668_v19, %v1087_v17  ;;  %v670_v22 = vsel %vm669_vm4, %v667_v20, %v1086_v18 }
 0x629   :  { %v672_v23 = vpack.c.bf16 %v671_v21, %v670_v22  ;;  %v839_v21 = vsub.s32 7, %v1240_v24 }
 0x62b   :  { %1032 = vmatmul.mubr.msk.bf16.vlgmr.msra.gmra.mrb[16].mxu1 %vm54_vm0, %v672_v23 }
 0x62c   :  { %1051 = vmatprep.mubr.msk.bf16.mxu1 %vm1166_vm1, %v1165_v15  ;;  %1044 = vmatpush3.bf16.msra.mxu1 %v1094_v48 }
 0x62d   :  { %1045 = vmatprep.subr.bf16.mxu1 %v1165_v15 }
 0x630   :  { %1046 = vmatpush3.bf16.msra.mxu1 %v1095_v49 }
 0x631   :  { %1047 = vmatprep.subr.bf16.mxu1 %v1165_v15 }
 0x634   :  { %1048 = vmatpush3.bf16.msra.mxu1 %v1096_v7 }
 0x635   :  { %1049 = vmatprep.subr.bf16.mxu1 %v1165_v15  ;;  %v840_v15 = vrot.slane %v1246_v26, %v839_v21 }
 0x638   :  { %1050 = vmatpush3.bf16.msra.mxu1 %v1097_v8 }
 0x6fe   :  { %v726_v27 = vpop.f32.mrb[16].mxu1 }
 0x6ff   :  { %v727_v28 = vadd.f32 %v726_v27, %v676_v47  ;;  %v1033_v29 = vpop.f32.mrb[17].mxu1 }
 0x700   :  { %v729_v30 = vpop.f32.mrb[18].mxu1 }
 0x701   :  { %v1341_v31 = vadd.f32 %v727_v28, %v1217_v0  ;;  %v730_v32 = vadd.f32 %v729_v30, %v676_v47  ;;  %v1034_v33 = vpop.f32.mrb[19].mxu1 }
 0x703   :  { %v1344_v34 = vadd.f32 %v730_v32, %v1222_v1  ;;  %v735_v35 = vsel %vm54_vm0, %v1341_v31, 0.0 }
 0x704   :  { %736 = vadd.xlane.f32.xlu0 %v735_v35 }
 0x705   :  { %v738_v36 = vsel %vm54_vm0, %v1344_v34, 0.0 }
 0x706   :  { %739 = vadd.xlane.f32.xlu1 %v738_v36 }
 0x791   :  { %v737_v37 = vpop.xlane.xlu0 %736 }
 0x792   :  { %v741_v38 = vmul.f32 0.03125, %v737_v37 }
 0x793   :  { %v740_v39 = vpop.xlane.xlu1 %739 }
 0x794   :  { %v743_v40 = vsub.f32 %v1341_v31, %v741_v38  ;;  %v742_v0 = vmul.f32 0.03125, %v740_v39 }
 0x796   :  { %v744_v41 = vsub.f32 %v1344_v34, %v742_v0  ;;  %v745_v42 = vmul.f32 %v743_v40, %v743_v40 }
 0x798   :  { %v747_v1 = vsel %vm54_vm0, %v745_v42, 0.0  ;;  %v746_v43 = vmul.f32 %v744_v41, %v744_v41 }
 0x799   :  { %748 = vadd.xlane.f32.xlu0 %v747_v1 }
 0x79a   :  { %v750_v44 = vsel %vm54_vm0, %v746_v43, 0.0 }
 0x79d   :  { %751 = vadd.xlane.f32.xlu0 %v750_v44 }
 0x826   :  { %v749_v50 = vpop.xlane.xlu0 %748 }
 0x827   :  { %v753_v51 = vmul.f32 0.03125, %v749_v50 }
 0x829   :  { %v755_v52 = vadd.f32 1e-06, %v753_v51 }
 0x82a   :  { %v752_v53 = vpop.xlane.xlu0 %751 }
 0x82b   :  { %1134 = vrsqrt.f32 %v755_v52  ;;  %v754_v54 = vmul.f32 0.03125, %v752_v53 }
 0x82d   :  { %v756_v55 = vadd.f32 1e-06, %v754_v54 }
 0x82f   :  { %1136 = vrsqrt.f32 %v756_v55 }
 0x835   :  { %v1135_v57 = vpop.eup %1134 }
 0x836   :  { %v759_v59 = vmul.f32 %v1135_v57, %v743_v40 }
 0x838   :  { %v765_v62 = vmul.f32 %v764_v58, %v759_v59 }
 0x839   :  { %v1137_v61 = vpop.eup %1136 }
 0x83a   :  { %v760_v63 = vmul.f32 %v1137_v61, %v744_v41  ;;  %v771_v4 = vadd.f32 %v770_v2, %v765_v62 }
 0x83c   :  { %v766_v3 = vmul.f32 %v764_v58, %v760_v63 }
 0x83e   :  { %v772_v5 = vadd.f32 %v770_v2, %v766_v3 }
 0x840   :  { %v773_v6 = vpack.c.bf16 %v772_v5, %v771_v4 }
 0x842   :  { %1040 = vmatmul.mubr.msk.bf16.vlgmr.msra.gmra.mrb[20].mxu0 %vm54_vm0, %v773_v6 }
 0x915   :  { %v827_v11 = vpop.f32.mrb[20].mxu0 }
 0x916   :  { %v828_v12 = vadd.f32 %v827_v11, %v777_v10  ;;  %v1041_v13 = vpop.f32.mrb[21].mxu0 }
 0x917   :  { %v830_v14 = vpop.f32.mrb[22].mxu0 }
 0x918   :  { %v831_v16 = vadd.f32 %v830_v14, %v777_v10  ;;  %v1042_v17 = vpop.f32.mrb[23].mxu0  ;;  %v834_v18 = vmax.f32 %v828_v12, 0.0 }
 0x91a   :  { %v835_v19 = vmax.f32 %v831_v16, 0.0 }
 0x91c   :  { %v836_v20 = vpack.c.bf16 %v835_v19, %v834_v18 }
 0x91e   :  { %1052 = vmatmul.mubr.msk.bf16.vlgmr.msra.gmra.mrb[20].mxu1 %vm865_vm5, %v836_v20 }
 0x9f1   :  { %v903_v22 = vpop.f32.mrb[20].mxu1 }
 0x9f2   :  { %v904_v23 = vadd.f32 %v903_v22, %v840_v15  ;;  %v1053_v25 = vpop.f32.mrb[21].mxu1 }
 0x9f3   :  { %v906_v47 = vpop.f32.mrb[22].mxu1 }
 0x9f4   :  { %v910_v27 = vadd.f32 %v904_v23, %v1341_v31  ;;  %v907_v28 = vadd.f32 %v906_v47, %v840_v15  ;;  %v1054_v29 = vpop.f32.mrb[23].mxu1 }
 0x9f6   :  { %912 = vst.msk [vmem:[%s1380_s3] sm:$0xff] %vm54_vm0, %v910_v27  ;;  %v911_v30 = vadd.f32 %v907_v28, %v1344_v34 }
 0x9f8   :  { %913 = vst.msk [vmem:[%s1380_s3 + $0x8] sm:$0xff] %vm54_vm0, %v911_v30 }
 0x9f9   :  { %918 = vsyncpa [#allocation3], 1 }

</bundles_post_ra>
